<compile_context>
chip_gen: v5e
topology: v5e:2x2
jax: 0.10.0
libtpu: 0.0.40
codegen_flags: <defaults>
</compile_context>

<pallas_src>
import functools

import jax
import jax.numpy as jnp
from jax.experimental import pallas as pl
from jax.experimental.pallas import tpu as pltpu


def _round_up(x, m):
    return ((x + m - 1) // m) * m


def _router_kernel(x_ref, wt_ref, scores_ref, weights_ref, indices_ref):
    """One token tile: logits -> softmax -> top-1 (max value + first-max index)."""
    x = x_ref[...]        # (tm, H), native input dtype -> straight to the MXU
    wt = wt_ref[...]      # (H, E), native dtype, pre-transposed in the wrapper

    # Logits accumulate in f32 on the MXU; no in-kernel transpose of W.
    logits = jnp.dot(x, wt, preferred_element_type=jnp.float32)   # (tm, E) f32

    num_experts = logits.shape[-1]
    col = jax.lax.broadcasted_iota(jnp.int32, logits.shape, 1)

    # Numerically stable softmax (f32).
    m = jnp.max(logits, axis=-1, keepdims=True)        # (tm, 1)
    e = jnp.exp(logits - m)                            # (tm, E)
    denom = jnp.sum(e, axis=-1, keepdims=True)         # (tm, 1)
    inv = pl.reciprocal(denom, approx=False)           # (tm, 1) == max(softmax) row-wise
    scores = e * inv                                   # (tm, E)

    # top-1: max(softmax) == exp(0)/denom == inv; first-max index (torch.max
    # tie-break) computed on logits against the already-computed row max.
    idx = jnp.min(jnp.where(logits == m, col, num_experts), axis=-1, keepdims=True)

    scores_ref[...] = scores.astype(scores_ref.dtype)
    weights_ref[...] = inv.astype(weights_ref.dtype)
    indices_ref[...] = idx.astype(jnp.int32)


@functools.lru_cache(maxsize=None)
def _vmem_capacity_bytes():
    """Generation-aware VMEM capacity; conservative (v7x-sized) fallback."""
    try:
        return int(pltpu.get_tpu_info().vmem_capacity_bytes)
    except Exception:
        return 64 * 1024 * 1024


@functools.partial(jax.jit, static_argnames=("block_tokens",))
def learned_router(x, w, *, block_tokens=None):
    """x: (..., hidden); w: (num_experts, hidden). Returns (scores, weights, indices)."""
    hidden = x.shape[-1]
    num_experts = w.shape[0]
    x2 = x.reshape(-1, hidden)              # flatten tokens, like x.view(-1, H)
    tokens = x2.shape[0]
    dtype_bytes = jnp.dtype(x.dtype).itemsize

    # --- Generation-aware VMEM budget (v5e/v6e: 128 MiB physical; v7x: 64 MiB/TC). ---
    vmem_cap = _vmem_capacity_bytes()
    if vmem_cap >= 100 * 1024 * 1024:
        tile_budget = 56 * 1024 * 1024      # v5e / v6e: go big, ~85% of HBM roofline
        vmem_limit = 72 * 1024 * 1024
    else:
        tile_budget = 24 * 1024 * 1024      # v7x: bounded, well under 64 MiB/TC
        vmem_limit = 40 * 1024 * 1024

    # --- Token tile size: largest tile whose *total* VMEM footprint (x double
    #     buffer, W, output tiles, f32 softmax temporaries) fits the budget. ---
    if block_tokens is None:
        h_lanes = _round_up(hidden, 128)
        e_lanes = _round_up(num_experts, 128)
        w_bytes = _round_up(hidden, 8) * e_lanes * dtype_bytes   # single-buffered W
        per_row = (2 * h_lanes * dtype_bytes        # x tile, double-buffered
                   + 2 * e_lanes * dtype_bytes      # scores tile, double-buffered
                   + 3 * e_lanes * 4                # f32 logits / exp / scores temps
                   + 2 * 2 * 128 * 4)               # weights + indices (tm,1) tiles
        tm = max(8, (tile_budget - w_bytes) // per_row)
        tm = max(8, min(2048, (tm // 8) * 8))
    else:
        tm = block_tokens
    tm = min(tm, _round_up(tokens, 8))
    if tokens > 8:
        # Guarantee >= 2 grid steps so ("parallel",) shards across both TCs on v7x.
        tm = min(tm, max(8, _round_up(pl.cdiv(tokens, 2), 8)))
    assert tm % 8 == 0, "block_tokens must be a multiple of 8"

    grid = (pl.cdiv(tokens, tm),)           # ragged last block handled by Pallas
    wt = w.T                                # (H, E); transposed once, outside the grid

    out_shapes = (
        jax.ShapeDtypeStruct((tokens, num_experts), x.dtype),   # scores (true width)
        jax.ShapeDtypeStruct((tokens, 1), x.dtype),              # expert_weights
        jax.ShapeDtypeStruct((tokens, 1), jnp.int32),             # expert_indices
    )

    cost = pl.CostEstimate(
        flops=2 * tokens * hidden * num_experts,
        transcendentals=tokens * num_experts,
        bytes_accessed=(tokens * hidden * dtype_bytes            # x
                        + hidden * num_experts * dtype_bytes     # W
                        + tokens * num_experts * dtype_bytes     # scores
                        + tokens * dtype_bytes                   # weights
                        + tokens * 4),                           # indices
    )

    scores, weights, indices = pl.pallas_call(
        _router_kernel,
        out_shape=out_shapes,
        grid_spec=pltpu.PrefetchScalarGridSpec(
            num_scalar_prefetch=0,
            grid=grid,
            in_specs=[
                # Streamed x tile (default double-buffering hides its HBM DMA).
                pl.BlockSpec((tm, hidden), lambda i: (i, 0)),
                # W is identical every step -> single buffer, halves its VMEM use.
                pl.BlockSpec((hidden, num_experts), lambda i: (0, 0),
                             pipeline_mode=pl.Buffered(1)),
            ],
            out_specs=[
                # Full-extent last dim -> exempt from the 128-lane rule, no padding.
                pl.BlockSpec((tm, num_experts), lambda i: (i, 0)),
                pl.BlockSpec((tm, 1), lambda i: (i, 0)),
                pl.BlockSpec((tm, 1), lambda i: (i, 0)),
            ],
        ),
        compiler_params=pltpu.CompilerParams(
            dimension_semantics=("parallel",),      # megacore-shardable on v7x
            vmem_limit_bytes=vmem_limit,
        ),
        cost_estimate=cost,
    )(x2, wt)

    # No token or expert padding -> outputs are returned as-is.
    return scores, weights, indices


def _reference(x, w):
    """Pure-JAX reference matching the PyTorch module (eval, top_k=1)."""
    hidden = x.shape[-1]
    x2 = x.reshape(-1, hidden).astype(jnp.float32)
    logits = x2 @ w.astype(jnp.float32).T
    scores = jax.nn.softmax(logits, axis=-1).astype(x.dtype)
    weights = jnp.max(scores, axis=-1, keepdims=True)
    indices = jnp.argmax(scores, axis=-1, keepdims=True).astype(jnp.int32)
    return scores, weights, indices


if __name__ == "__main__":
    # Small, module-consistent shapes: batch=2, seq=8, hidden=32, num_experts=8.
    batch, seq, hidden, num_experts = 2, 8, 32, 8

    key = jax.random.PRNGKey(0)
    kx, kw = jax.random.split(key)
    x = jax.random.normal(kx, (batch, seq, hidden), dtype=jnp.float32)
    # Deterministic init for torch.nn.Linear(hidden, num_experts, bias=False).weight
    w = jax.random.normal(kw, (num_experts, hidden), dtype=jnp.float32) * 0.02

    scores, weights, indices = learned_router(x, w)
    jax.block_until_ready((scores, weights, indices))

    ref_scores, ref_weights, ref_indices = _reference(x, w)
    assert scores.shape == (batch * seq, num_experts)
    assert weights.shape == (batch * seq, 1)
    assert indices.shape == (batch * seq, 1)
    assert jnp.allclose(scores, ref_scores, atol=1e-5, rtol=1e-5)
    assert jnp.allclose(weights, ref_weights, atol=1e-5, rtol=1e-5)
    assert jnp.array_equal(indices, ref_indices)

    print("KERNEL_OK")
</pallas_src>

<mosaic_0001>
module attributes {stable_mosaic.version = 11 : i64} {
  func.func @_router_kernel(%arg0: i32, %arg1: memref<8x32xf32, #tpu.memory_space<vmem>>, %arg2: memref<32x8xf32, #tpu.memory_space<vmem>>, %arg3: memref<8x8xf32, #tpu.memory_space<vmem>>, %arg4: memref<8x1xf32, #tpu.memory_space<vmem>>, %arg5: memref<8x1xi32, #tpu.memory_space<vmem>>) attributes {dimension_semantics = [#tpu.dimension_semantics<parallel>], iteration_bounds = array<i64: 2>, scalar_prefetch = 0 : i64, scratch_operands = 0 : i64, tpu.core_type = #tpu.core_type<tc>, window_params = [{transform_indices = @transform_0, window_bounds = array<i64: 8, 32>}, {pipeline_mode = #tpu.pipeline_mode<synchronous>, transform_indices = @transform_1, window_bounds = array<i64: 32, 8>}, {transform_indices = @transform_2, window_bounds = array<i64: 8, 8>}, {transform_indices = @transform_3, window_bounds = array<i64: 8, 1>}, {transform_indices = @transform_4, window_bounds = array<i64: 8, 1>}]} {
    %c0 = arith.constant 0 : index
    %c0_0 = arith.constant 0 : index
    %0 = vector.load %arg1[%c0, %c0_0] : memref<8x32xf32, #tpu.memory_space<vmem>>, vector<8x32xf32>
    %c0_1 = arith.constant 0 : index
    %c0_2 = arith.constant 0 : index
    %1 = vector.load %arg2[%c0_1, %c0_2] : memref<32x8xf32, #tpu.memory_space<vmem>>, vector<32x8xf32>
    %cst = arith.constant dense<0.000000e+00> : vector<8x8xf32>
    %2 = tpu.matmul %0, %1, %cst {dimension_numbers = #tpu.dot_dimension_numbers<[1], [0], [0], [1], [0, 0, 1, 1], [], []>} : vector<8x32xf32>, vector<32x8xf32>, vector<8x8xf32> -> vector<8x8xf32>
    %3 = tpu.iota {dimensions = array<i32: 1>} : vector<8x8xi32>
    %cst_3 = arith.constant dense<0xFF800000> : vector<8xf32>
    %4 = vector.multi_reduction <maximumf>, %2, %cst_3 [1] : vector<8x8xf32> to vector<8xf32>
    %5 = vector.shape_cast %4 : vector<8xf32> to vector<8x1xf32>
    %6 = vector.broadcast %5 : vector<8x1xf32> to vector<8x8xf32>
    %7 = arith.subf %2, %6 : vector<8x8xf32>
    %8 = math.exp %7 : vector<8x8xf32>
    %cst_4 = arith.constant dense<0.000000e+00> : vector<8xf32>
    %9 = vector.multi_reduction <add>, %8, %cst_4 [1] : vector<8x8xf32> to vector<8xf32>
    %10 = vector.shape_cast %9 : vector<8xf32> to vector<8x1xf32>
    %11 = tpu.reciprocal %10 : vector<8x1xf32> -> vector<8x1xf32>
    %12 = vector.broadcast %11 : vector<8x1xf32> to vector<8x8xf32>
    %13 = arith.mulf %8, %12 : vector<8x8xf32>
    %14 = vector.broadcast %5 : vector<8x1xf32> to vector<8x8xf32>
    %15 = arith.cmpf oeq, %2, %14 : vector<8x8xf32>
    %c8_i32 = arith.constant 8 : i32
    %16 = vector.broadcast %c8_i32 : i32 to vector<8x8xi32>
    %17 = arith.select %15, %3, %16 : vector<8x8xi1>, vector<8x8xi32>
    %cst_5 = arith.constant dense<2147483647> : vector<8xi32>
    %18 = vector.multi_reduction <minsi>, %17, %cst_5 [1] : vector<8x8xi32> to vector<8xi32>
    %19 = vector.shape_cast %18 : vector<8xi32> to vector<8x1xi32>
    %c0_6 = arith.constant 0 : index
    %c0_7 = arith.constant 0 : index
    %20 = vector.load %arg3[%c0_6, %c0_7] : memref<8x8xf32, #tpu.memory_space<vmem>>, vector<8x8xf32>
    tpu.vector_store %arg3[%c0_6, %c0_7], %13 {strides = array<i32>} : memref<8x8xf32, #tpu.memory_space<vmem>>, vector<8x8xf32>,
    %c0_8 = arith.constant 0 : index
    %c0_9 = arith.constant 0 : index
    %21 = vector.load %arg4[%c0_8, %c0_9] : memref<8x1xf32, #tpu.memory_space<vmem>>, vector<8x1xf32>
    tpu.vector_store %arg4[%c0_8, %c0_9], %11 {strides = array<i32>} : memref<8x1xf32, #tpu.memory_space<vmem>>, vector<8x1xf32>,
    %c0_10 = arith.constant 0 : index
    %c0_11 = arith.constant 0 : index
    %22 = vector.load %arg5[%c0_10, %c0_11] : memref<8x1xi32, #tpu.memory_space<vmem>>, vector<8x1xi32>
    tpu.vector_store %arg5[%c0_10, %c0_11], %19 {strides = array<i32>} : memref<8x1xi32, #tpu.memory_space<vmem>>, vector<8x1xi32>,
    return
  }
  func.func @transform_0(%arg0: i32) -> (i32, i32) {
    %c0_i32 = arith.constant 0 : i32
    %c0_i32_0 = arith.constant 0 : i32
    return %arg0, %c0_i32 : i32, i32
  }
  func.func @transform_1(%arg0: i32) -> (i32, i32) {
    %c0_i32 = arith.constant 0 : i32
    %c0_i32_0 = arith.constant 0 : i32
    %c0_i32_1 = arith.constant 0 : i32
    return %c0_i32, %c0_i32_0 : i32, i32
  }
  func.func @transform_2(%arg0: i32) -> (i32, i32) {
    %c0_i32 = arith.constant 0 : i32
    %c0_i32_0 = arith.constant 0 : i32
    return %arg0, %c0_i32 : i32, i32
  }
  func.func @transform_3(%arg0: i32) -> (i32, i32) {
    %c0_i32 = arith.constant 0 : i32
    %c0_i32_0 = arith.constant 0 : i32
    return %arg0, %c0_i32 : i32, i32
  }
  func.func @transform_4(%arg0: i32) -> (i32, i32) {
    %c0_i32 = arith.constant 0 : i32
    %c0_i32_0 = arith.constant 0 : i32
    return %arg0, %c0_i32 : i32, i32
  }
}

</mosaic_0001>

<bundles_post_ra>
// kernel: learned_router.1
= control target key start
LH: loop header
LB: loop body
LE: loop exit
PB: predicated region body
PF: predicated region fallthrough
CT: control target
= control target key end

     0   :  { %s463_s15 = smov 0   ;;  %s508_s0 = inlined_call_operand.vmem [shape: f32[16,32], index: 0, kind: input, shape index: {}]   ;;  %s509_s1 = inlined_call_operand.vmem [shape: f32[32,8], index: 1, kind: input, shape index: {}]   ;;  %s510_s2 = inlined_call_operand.vmem [shape: f32[16,8], index: 2, kind: output, shape index: {0}]   ;;  %s511_s3 = inlined_call_operand.vmem [shape: f32[16,1], index: 3, kind: output, shape index: {1}]   ;;  %s512_s4 = inlined_call_operand.vmem [shape: s32[16,1], index: 4, kind: output, shape index: {2}]  }
   0x1 LB: > { %s406_s16 = sadd.s32 4294967295, %s436_s15   ;;  %p410_p0 = scmp.ge.s32.totalorder %s436_s15, 1  ;;  %s436_s15 = sphi %s463_s15, %s15_s15  }
   0x2   : > { %p166_p1 = scmp.lt.s32.totalorder %s436_s15, 3 }
   0x4   : > { %p167_p2 = pnand %p410_p0, %p166_p1 }
   0x5   : > { %p198_p3 = scmp.lt.s32.totalorder (!%p167_p2), %s406_s16, 1 }
   0x6   : > { %170 = sbr.rel (%p167_p2) target bundleno = 508 (0x1fc), region = 28 }
   0xb   : > { %v218_v0 = vld [vmem:[%s509_s1 + $0x18] sm:$0xff]  ;;  %v217_v1 = vld [vmem:[%s509_s1 + $0x10] sm:$0xff]  ;;  %v216_v2 = vld [vmem:[%s509_s1 + $0x8] sm:$0xff]  ;;  %s514_s16 = smov (!%p198_p3, %s406_s16), 1  ;;  %vm219_vm0 = vcmask 261120   ;;  %vm245_vm1 = vcmask 64512   ;;  %v243_v7 = vlaneseq }
   0xc   : > { %235 = vmatpush.msra.mxu0 %v218_v0  ;;  %v215_v3 = vld [vmem:[%s509_s1] sm:$0xff]  ;;  %s483_s25 = sshll.u32 %s514_s16, 3  ;;  %vm288_vm7 = vcmask 7168  }
   0xd   : > { %s201_s28 = scalar_lea.vmem %s508_s0, %s483_s25  ;;  %v244_v8 = vand.u32 127, %v243_v7  ;;  %s209_s5 = scalar_lea.vmem %s511_s3, %s483_s25 }
   0xe   : > { %236 = vmatpush.msra.mxu0 %v217_v1  ;;  %v214_v4 = vld [vmem:[%s201_s28] sm:$0xff]  ;;  %s205_s8 = scalar_lea.vmem %s510_s2, %s483_s25  ;;  %s213_s11 = scalar_lea.vmem %s512_s4, %s483_s25 }
  0x10   : > { %237 = vmatpush.msra.mxu0 %v216_v2 }
  0x12   : > { %238 = vmatpush.msra.mxu0 %v215_v3 }
  0x13   : > { %415 = vmatmul.msk.f32.vlgmr.msra.gmra.mxu0 %vm219_vm0, %v214_v4 }
  0x90   : > { %v240_v5 = vpop.f32.mrf.mxu0 }
  0x91   : > { %v246_v6 = vsel %vm245_vm1, %v240_v5, -inf }
  0x92   : > { %247 = vmax.xlane.f32.xlu0 %v246_v6 }
 0x105   : > { %v248_v9 = vpop.xlane.xlu0 %247 }
 0x106   : > { %v249_v10 = vsub.f32 %v240_v5, %v248_v9  ;;  %vm270_vm2 = vcmp.eq.f32.partialorder %v240_v5, %v248_v9 }
 0x107   : > { %v271_v11 = vsel %vm270_vm2, %v244_v8, 8 }
 0x108   : > { %v250_v12 = vmul.f32 1.442695, %v249_v10  ;;  %v272_v13 = vsel %vm245_vm1, %v271_v11, 2147483647 }
 0x109   : > { %v274_v14 = vshra.s32 %v272_v13, 16  ;;  %v273_v18 = vand.u32 65535, %v272_v13 }
 0x10a   : > { %426 = vpow2.f32 %v250_v12 }
 0x10b   : > { %v276_v15 = vcvt.s32.f32 %v274_v14  ;;  %v275_v20 = vcvt.s32.f32 %v273_v18 }
 0x10d   : > { %277 = vmin.xlane.f32.xlu0 %v276_v15 }
 0x110   : > { %v427_v16 = vpop.eup %426 }
 0x111   : > { %v252_v17 = vsel %vm245_vm1, %v427_v16, 0.0 }
 0x112   : > { %253 = vadd.xlane.f32.xlu1 %v252_v17 }
 0x180   : > { %v278_v19 = vpop.xlane.xlu0 %277 }
 0x181   : > { %vm279_vm3 = vcmp.eq.f32.partialorder %v276_v15, %v278_v19  ;;  %v284_v34 = vcvt.f32.s32 %v278_v19 }
 0x182   : > { %v280_v21 = vsel %vm279_vm3, %v275_v20, inf }
 0x183   : > { %281 = vmin.xlane.f32.xlu1 %v280_v21  ;;  %v285_v36 = vshll.u32 %v284_v34, 16 }
 0x185   : > { %v254_v22 = vpop.xlane.xlu1 %253 }
 0x186   : > { %428 = vrcp.f32 %v254_v22  ;;  %v266_v26 = vand.u32 2147483648, %v254_v22  ;;  %v264_v28 = vand.u32 2147483647, %v254_v22  ;;  %vm260_vm5 = vweird.f32 %v254_v22 }
 0x188   : > { %v267_v30 = vor.u32 1.1754944e-38, %v266_v26  ;;  %vm265_vm8 = vcmp.eq.f32.partialorder %v264_v28, 8.507059e+37 }
 0x18c   : > { %v429_v23 = vpop.eup %428 }
 0x18d   : > { %v256_v24 = vmul.f32 %v429_v23, %v254_v22  ;;  %vm261_vm4 = vweird.f32 %v429_v23 }
 0x18e   : > { %vm262_vm6 = vmor %vm260_vm5, %vm261_vm4 }
 0x18f   : > { %v257_v25 = vsub.f32 1.0, %v256_v24 }
 0x191   : > { %v258_v27 = vmul.f32 %v429_v23, %v257_v25 }
 0x193   : > { %v259_v29 = vadd.f32 %v429_v23, %v258_v27 }
 0x195   : > { %v263_v31 = vsel %vm262_vm6, %v429_v23, %v259_v29 }
 0x196   : > { %v268_v32 = vsel %vm265_vm8, %v267_v30, %v263_v31 }
 0x197   : > { %v269_v33 = vmul.f32 %v427_v16, %v268_v32  ;;  %289 = vst.msk [vmem:[%s209_s5] sm:$0xff] %vm288_vm7, %v268_v32 }
 0x199   : > { %287 = vst.msk [vmem:[%s205_s8] sm:$0xff] %vm245_vm1, %v269_v33 }
 0x1f6   : > { %v282_v35 = vpop.xlane.xlu1 %281 }
 0x1f7   : > { %v283_v37 = vcvt.f32.s32 %v282_v35 }
 0x1f9   : > { %v286_v38 = vadd.s32 %v285_v36, %v283_v37 }
 0x1fb   : > { %290 = vst.msk [vmem:[%s213_s11] sm:$0xff] %vm288_vm7, %v286_v38 }
 0x1fc PF: > { %s15_s15 = sadd.s32 1, %s436_s15  }
 0x1fd   : > { %p12_p4 = scmp.ge.s32.totalorder %s15_s15, 4  }
 0x1ff   :  { %14 = sbr.rel (!%p12_p4) target bundleno = 1 (0x1), region = 82 }

</bundles_post_ra>
